<compile_context>
chip_gen: v7x
topology: tpu7x:2x2x1
jax: 0.10.0
libtpu: 0.0.40
codegen_flags: <defaults>
</compile_context>

<pallas_src>
import jax
import jax.numpy as jnp
from jax.experimental import pallas as pl
from jax.experimental.pallas import tpu as pltpu


def _round_up(x, m):
    return (x + m - 1) // m * m


def _vmem_limit_bytes():
    # v7x has only 64 MiB VMEM per TensorCore; leave headroom for the
    # double-buffered BlockSpec inputs.  Query the chip when possible.
    try:
        cap = int(pltpu.get_tpu_info().vmem_capacity_bytes)
    except Exception:
        cap = 64 * 1024 * 1024
    return min(max(cap - 16 * 1024 * 1024, 32 * 1024 * 1024), 96 * 1024 * 1024)


_VMEM_LIMIT = _vmem_limit_bytes()


def _spatial_block(s, target=2048):
    """Largest multiple of 8 <= target dividing s (or s itself if small)."""
    if s <= target:
        return s
    blk = (target // 8) * 8
    while blk > 0 and s % blk:
        blk -= 8
    return blk if blk > 0 else s


def _lane_block(s, target=2048):
    """Largest multiple of 128 <= target dividing s (or s itself if small)."""
    if s <= target:
        return s
    blk = (target // 128) * 128
    while blk > 0 and s % blk:
        blk -= 128
    return blk if blk > 0 else s


# ---------------------------------------------------------------------------
# Pallas GEMM + bias (the conv / conv-transpose / final-layer hot path)
# ---------------------------------------------------------------------------
def _matmul_bias_kernel(a_ref, w_ref, b_ref, o_ref, acc_ref):
    @pl.when(pl.program_id(2) == 0)
    def _():
        acc_ref[...] = jnp.zeros_like(acc_ref)

    acc_ref[...] += jnp.dot(a_ref[...], w_ref[...],
                            preferred_element_type=jnp.float32)

    @pl.when(pl.program_id(2) == pl.num_programs(2) - 1)
    def _():
        o_ref[...] = (acc_ref[...] + b_ref[...]).astype(o_ref.dtype)


def matmul_bias(a, w, b):
    """a: (M, K), w: (K, N), b: (N,) -> (M, N) float32.

    bf16 operands, f32 accumulation + bias.  Tile sizes adapt to the problem:
    small-M (deep decoder / encoder bottleneck) layers use an 16-row M tile so
    the MXU is not fed padding rows, wide-K layers get 1024-wide K tiles.
    """
    M, K = a.shape
    _, N = w.shape

    tm = min(512, _round_up(M, 16))
    tn_full = _round_up(N, 128)
    tn = tn_full if tn_full <= 512 else 256
    tk_full = _round_up(K, 128)
    tk = tk_full if tk_full <= 1024 else 1024

    Mp, Kp, Np = _round_up(M, tm), _round_up(K, tk), _round_up(N, tn)

    a_p = jnp.pad(a.astype(jnp.bfloat16), ((0, Mp - M), (0, Kp - K)))
    w_p = jnp.pad(w.astype(jnp.bfloat16), ((0, Kp - K), (0, Np - N)))
    b_p = jnp.pad(b.astype(jnp.float32).reshape(1, N), ((0, 0), (0, Np - N)))

    cost = pl.CostEstimate(
        flops=2 * Mp * Kp * Np,
        transcendentals=0,
        bytes_accessed=Mp * Kp * 2 + Kp * Np * 2 + Mp * Np * 4)

    out = pl.pallas_call(
        _matmul_bias_kernel,
        out_shape=jax.ShapeDtypeStruct((Mp, Np), jnp.float32),
        grid_spec=pltpu.PrefetchScalarGridSpec(
            num_scalar_prefetch=0,
            grid=(Mp // tm, Np // tn, Kp // tk),
            in_specs=[pl.BlockSpec((tm, tk), lambda i, j, k: (i, k)),
                      pl.BlockSpec((tk, tn), lambda i, j, k: (k, j)),
                      pl.BlockSpec((1, tn), lambda i, j, k: (0, j))],
            out_specs=pl.BlockSpec((tm, tn), lambda i, j, k: (i, j)),
            scratch_shapes=[pltpu.VMEM((tm, tn), jnp.float32)]),
        compiler_params=pltpu.CompilerParams(
            dimension_semantics=("parallel", "parallel", "arbitrary"),
            vmem_limit_bytes=_VMEM_LIMIT),
        cost_estimate=cost,
    )(a_p, w_p, b_p)

    if Mp == M and Np == N:
        return out
    return out[:M, :N]


# ---------------------------------------------------------------------------
# InstanceNorm3d (affine, eps=1e-5) + LeakyReLU(0.01), channels-last
# moments -> small XLA reduction (f32); scale/shift/LeakyReLU -> tiled Pallas.
# ---------------------------------------------------------------------------
def _scale_shift_lrelu_kernel(x_ref, sc_ref, sh_ref, o_ref):
    x = x_ref[...]                           # (1, s_blk, C) float32
    y = x * sc_ref[...] + sh_ref[...]
    o_ref[...] = jnp.where(y >= 0, y, 0.01 * y)


def instnorm_lrelu(y, gamma, beta, eps=1e-5):
    """y: (N, S, C) float32 -> (N, S, C) float32."""
    N, S, C = y.shape
    yf = y.astype(jnp.float32)
    mean = jnp.mean(yf, axis=1, keepdims=True)                         # (N,1,C)
    var = jnp.mean(jnp.square(yf - mean), axis=1, keepdims=True)       # biased
    inv = jax.lax.rsqrt(var + eps)
    scale = inv * gamma.astype(jnp.float32).reshape(1, 1, C)
    shift = beta.astype(jnp.float32).reshape(1, 1, C) - mean * scale

    s_blk = _spatial_block(S)
    return pl.pallas_call(
        _scale_shift_lrelu_kernel,
        out_shape=jax.ShapeDtypeStruct((N, S, C), jnp.float32),
        grid_spec=pltpu.PrefetchScalarGridSpec(
            num_scalar_prefetch=0,
            grid=(N, S // s_blk),
            in_specs=[pl.BlockSpec((1, s_blk, C), lambda n, t: (n, t, 0)),
                      pl.BlockSpec((1, 1, C), lambda n, t: (n, 0, 0)),
                      pl.BlockSpec((1, 1, C), lambda n, t: (n, 0, 0))],
            out_specs=pl.BlockSpec((1, s_blk, C), lambda n, t: (n, t, 0))),
        compiler_params=pltpu.CompilerParams(
            dimension_semantics=("parallel", "parallel"),
            vmem_limit_bytes=_VMEM_LIMIT),
    )(yf, scale, shift)


# ---------------------------------------------------------------------------
# Softmax over the channel axis of (N, C, S); tiled lane-dense over S.
# ---------------------------------------------------------------------------
def _softmax_c_kernel(x_ref, o_ref):
    x = x_ref[...]                           # (1, C, s_blk) float32
    m = jnp.max(x, axis=1, keepdims=True)
    e = jnp.exp(x - m)
    o_ref[...] = e / jnp.sum(e, axis=1, keepdims=True)


def softmax_channels(x):
    N, C, S = x.shape
    s_blk = _lane_block(S)
    return pl.pallas_call(
        _softmax_c_kernel,
        out_shape=jax.ShapeDtypeStruct((N, C, S), jnp.float32),
        grid_spec=pltpu.PrefetchScalarGridSpec(
            num_scalar_prefetch=0,
            grid=(N, S // s_blk),
            in_specs=[pl.BlockSpec((1, C, s_blk), lambda n, t: (n, 0, t))],
            out_specs=pl.BlockSpec((1, C, s_blk), lambda n, t: (n, 0, t))),
        compiler_params=pltpu.CompilerParams(
            dimension_semantics=("parallel", "parallel"),
            vmem_limit_bytes=_VMEM_LIMIT),
    )(x.astype(jnp.float32))


# ---------------------------------------------------------------------------
# Conv3d (k=3, pad=1, stride in {1,2}) -- channels-last im2col + Pallas GEMM.
# The im2col slabs concatenate along the channel (lane) axis, so the GEMM
# reshape is a free row-major view; no transposes are needed.
# ---------------------------------------------------------------------------
# TODO(synk): implicit-GEMM conv (folding the 27 taps into the K grid axis via
# shifted-window index_maps) would remove the materialized bf16 im2col entirely.
def conv3d_k3p1(x, w, b, stride=1):
    """x: (N, D, H, W, Cin); w: (Cout, Cin, 3, 3, 3); b: (Cout,)."""
    N, D, H, W, C = x.shape
    Cout = w.shape[0]
    s = stride
    Do = (D + 2 - 3) // s + 1
    Ho = (H + 2 - 3) // s + 1
    Wo = (W + 2 - 3) // s + 1

    xp = jnp.pad(x.astype(jnp.bfloat16),
                 ((0, 0), (1, 1), (1, 1), (1, 1), (0, 0)))
    slabs = []
    for a in range(3):
        for bb in range(3):
            for c in range(3):
                slabs.append(xp[:,
                                a:a + s * (Do - 1) + 1:s,
                                bb:bb + s * (Ho - 1) + 1:s,
                                c:c + s * (Wo - 1) + 1:s,
                                :])
    patches = jnp.concatenate(slabs, axis=-1)            # (N, Do, Ho, Wo, 27*C)
    patches = patches.reshape(N * Do * Ho * Wo, 27 * C)  # free (row-major)
    # weight rows ordered (a, b, c, cin) to match the patch column ordering
    w2 = jnp.transpose(w, (2, 3, 4, 1, 0)).reshape(27 * C, Cout)
    y = matmul_bias(patches, w2, b)                      # Pallas GEMM (f32 out)
    return y.reshape(N, Do, Ho, Wo, Cout)


# ---------------------------------------------------------------------------
# ConvTranspose3d (k=2, stride=2) -- channels-last GEMM + small scatter reshape
# ---------------------------------------------------------------------------
def conv_transpose3d_k2s2(x, w, b):
    """x: (N, D, H, W, Cin); w: (Cin, Cout, 2, 2, 2); b: (Cout,)."""
    N, D, H, W, Cin = x.shape
    Cout = w.shape[1]
    x2 = x.reshape(N * D * H * W, Cin)                   # free (channels-last)
    w2 = jnp.transpose(w, (0, 2, 3, 4, 1)).reshape(Cin, 8 * Cout)
    b2 = jnp.tile(b, 8)
    y = matmul_bias(x2, w2, b2)                          # Pallas GEMM
    y = y.reshape(N, D, H, W, 2, 2, 2, Cout)
    y = y.transpose(0, 1, 4, 2, 5, 3, 6, 7).reshape(N, 2 * D, 2 * H, 2 * W, Cout)
    return y


# ---------------------------------------------------------------------------
# ConvDropoutNormNonlin: conv -> (dropout: identity in eval) -> instnorm -> lrelu
# ---------------------------------------------------------------------------
def conv_dropout_norm_nonlin(x, p, stride=1, transpose=False):
    if transpose:
        y = conv_transpose3d_k2s2(x, p['w'], p['b'])
    else:
        y = conv3d_k3p1(x, p['w'], p['b'], stride)
    # TODO(synk): Dropout3d(p=0.5) is stochastic in train mode; eval-mode identity here.
    N, D, H, W, C = y.shape
    y = instnorm_lrelu(y.reshape(N, D * H * W, C), p['gamma'], p['beta'])
    return y.reshape(N, D, H, W, C)


# ---------------------------------------------------------------------------
# Trilinear upsample (align_corners=False), channels-last. Pure-JAX lerp glue.
# ---------------------------------------------------------------------------
def _lerp_axis(x, axis, out_size):
    in_size = x.shape[axis]
    dst = jnp.arange(out_size, dtype=jnp.float32)
    src = jnp.maximum((dst + 0.5) * (in_size / out_size) - 0.5, 0.0)
    i0 = jnp.clip(jnp.floor(src).astype(jnp.int32), 0, in_size - 1)
    i1 = jnp.minimum(i0 + 1, in_size - 1)
    w1 = src - i0.astype(jnp.float32)
    w0 = 1.0 - w1
    x0 = jnp.take(x, i0, axis=axis)
    x1 = jnp.take(x, i1, axis=axis)
    shp = [1] * x.ndim
    shp[axis] = out_size
    return x0 * w0.reshape(shp) + x1 * w1.reshape(shp)


def upsample_trilinear(x, scale):
    # x: (N, D, H, W, C) channels-last
    N, D, H, W, C = x.shape
    x = _lerp_axis(x, 1, D * scale)
    x = _lerp_axis(x, 2, H * scale)
    x = _lerp_axis(x, 3, W * scale)
    return x


# ---------------------------------------------------------------------------
# Parameter initialization (deterministic, shapes per the PyTorch __init__)
# ---------------------------------------------------------------------------
def conv_params(key, cin, cout, k=3):
    k1, k2 = jax.random.split(key)
    fan_in = cin * k ** 3
    w = jax.random.normal(k1, (cout, cin, k, k, k), jnp.float32) / jnp.sqrt(fan_in)
    b = 0.01 * jax.random.normal(k2, (cout,), jnp.float32)
    return {'w': w, 'b': b}


def block_params(key, cin, cout, transpose=False):
    if transpose:
        k1, k2 = jax.random.split(key)
        w = jax.random.normal(k1, (cin, cout, 2, 2, 2), jnp.float32) / jnp.sqrt(cin * 8)
        b = 0.01 * jax.random.normal(k2, (cout,), jnp.float32)
        p = {'w': w, 'b': b}
    else:
        p = conv_params(key, cin, cout, 3)
    p['gamma'] = jnp.ones((cout,), jnp.float32)   # InstanceNorm3d affine init
    p['beta'] = jnp.zeros((cout,), jnp.float32)
    return p


def init_params(key):
    keys = iter(jax.random.split(key, 64))
    P = {}
    P['enc1'] = [block_params(next(keys), 4, 32), block_params(next(keys), 32, 32)]
    P['enc2'] = [block_params(next(keys), 32, 64), block_params(next(keys), 64, 64)]
    P['enc3'] = [block_params(next(keys), 64, 128), block_params(next(keys), 128, 128)]
    P['enc4'] = [block_params(next(keys), 128, 256), block_params(next(keys), 256, 256)]
    P['enc5'] = [block_params(next(keys), 256, 320), block_params(next(keys), 320, 320)]
    P['dec1_trans'] = block_params(next(keys), 320, 256, transpose=True)
    P['dec1'] = [block_params(next(keys), 512, 256), block_params(next(keys), 256, 256)]
    P['dec2_trans'] = block_params(next(keys), 256, 128, transpose=True)
    P['dec2'] = [block_params(next(keys), 256, 128), block_params(next(keys), 128, 128)]
    P['dec3_trans'] = block_params(next(keys), 128, 64, transpose=True)
    P['dec3'] = [block_params(next(keys), 128, 64), block_params(next(keys), 64, 64)]
    P['dec4_trans'] = block_params(next(keys), 64, 32, transpose=True)
    P['dec4'] = [block_params(next(keys), 64, 32), block_params(next(keys), 32, 32)]
    P['final1'] = conv_params(next(keys), 32, 5, 3)
    P['final2'] = conv_params(next(keys), 64, 5, 3)
    P['final3'] = conv_params(next(keys), 128, 5, 3)
    P['final4'] = conv_params(next(keys), 256, 5, 3)
    return P


# ---------------------------------------------------------------------------
# Full forward pass (input in PyTorch NCDHW; converted to channels-last once)
# ---------------------------------------------------------------------------
def unet3d_deepsupervision_forward(x, P):
    bs, nc, nx, ny, nz = x.shape
    h = jnp.transpose(x, (0, 2, 3, 4, 1)).astype(jnp.float32)   # (N, D, H, W, C)

    def seq2(inp, p0, p1, s0):
        t = conv_dropout_norm_nonlin(inp, p0, stride=s0)
        return conv_dropout_norm_nonlin(t, p1, stride=1)

    x1 = seq2(h,  P['enc1'][0], P['enc1'][1], 1)
    x2 = seq2(x1, P['enc2'][0], P['enc2'][1], 2)
    x3 = seq2(x2, P['enc3'][0], P['enc3'][1], 2)
    x4 = seq2(x3, P['enc4'][0], P['enc4'][1], 2)
    x5 = seq2(x4, P['enc5'][0], P['enc5'][1], 2)

    u = conv_dropout_norm_nonlin(x5, P['dec1_trans'], transpose=True)
    x4_ = seq2(jnp.concatenate([x4, u], axis=-1), P['dec1'][0], P['dec1'][1], 1)
    u = conv_dropout_norm_nonlin(x4_, P['dec2_trans'], transpose=True)
    x3_ = seq2(jnp.concatenate([x3, u], axis=-1), P['dec2'][0], P['dec2'][1], 1)
    u = conv_dropout_norm_nonlin(x3_, P['dec3_trans'], transpose=True)
    x2_ = seq2(jnp.concatenate([x2, u], axis=-1), P['dec3'][0], P['dec3'][1], 1)
    u = conv_dropout_norm_nonlin(x2_, P['dec4_trans'], transpose=True)
    x1_ = seq2(jnp.concatenate([x1, u], axis=-1), P['dec4'][0], P['dec4'][1], 1)

    Cf = P['final1']['w'].shape[0]

    def head(feat, fp, scale):
        y = conv3d_k3p1(feat, fp['w'], fp['b'], 1)         # logits, channels-last
        if scale > 1:
            y = upsample_trilinear(y, scale)               # upsample BEFORE softmax
        y = jnp.transpose(y, (0, 4, 1, 2, 3))              # (N, Cf, nx, ny, nz)
        n = y.shape[0]
        y = softmax_channels(y.reshape(n, Cf, -1))         # Pallas softmax over C
        return y.reshape(n, Cf, nx, ny, nz)

    o1 = head(x1_, P['final1'], 1)
    o2 = head(x2_, P['final2'], 2)
    o3 = head(x3_, P['final3'], 4)
    o4 = head(x4_, P['final4'], 8)

    # torch.stack([...]).permute(1,0,2,3,4,5) == stack on axis=1
    return jnp.stack([o1, o2, o3, o4], axis=1)             # (bs, 4, 5, nx, ny, nz)


if __name__ == "__main__":
    key = jax.random.PRNGKey(0)
    pkey, xkey = jax.random.split(key)
    params = init_params(pkey)

    bs, nc, s = 1, 4, 16          # smallest patch divisible by 2^4 for 5 levels
    x = jax.random.normal(xkey, (bs, nc, s, s, s), jnp.float32)

    out = unet3d_deepsupervision_forward(x, params)
    out = jax.block_until_ready(out)

    assert out.shape == (bs, 4, 5, s, s, s), out.shape
    assert bool(jnp.isfinite(out).all())
    print("KERNEL_OK")
</pallas_src>

<mosaic_0001>
module attributes {stable_mosaic.version = 11 : i64} {
  func.func @_matmul_bias_kernel(%arg0: i32, %arg1: i32, %arg2: i32, %arg3: memref<512x128xbf16, #tpu.memory_space<vmem>>, %arg4: memref<128x128xbf16, #tpu.memory_space<vmem>>, %arg5: memref<1x128xf32, #tpu.memory_space<vmem>>, %arg6: memref<512x128xf32, #tpu.memory_space<vmem>>, %arg7: memref<512x128xf32, #tpu.memory_space<vmem>>) attributes {dimension_semantics = [#tpu.dimension_semantics<parallel>, #tpu.dimension_semantics<parallel>, #tpu.dimension_semantics<arbitrary>], iteration_bounds = array<i64: 8, 1, 1>, scalar_prefetch = 0 : i64, scratch_operands = 1 : i64, tpu.core_type = #tpu.core_type<tc>, window_params = [{transform_indices = @transform_0, window_bounds = array<i64: 512, 128>}, {transform_indices = @transform_1, window_bounds = array<i64: 128, 128>}, {transform_indices = @transform_2, window_bounds = array<i64: 1, 128>}, {transform_indices = @transform_3, window_bounds = array<i64: 512, 128>}]} {
    %c0_i32 = arith.constant 0 : i32
    %0 = arith.cmpi eq, %arg2, %c0_i32 : i32
    %1 = arith.extui %0 : i1 to i32
    %c0_i32_0 = arith.constant 0 : i32
    %2 = arith.cmpi ne, %1, %c0_i32_0 : i32
    scf.if %2 {
      %cst_10 = arith.constant 0.000000e+00 : f32
      %12 = vector.broadcast %cst_10 : f32 to vector<512x128xf32>
      %c0_11 = arith.constant 0 : index
      %c0_12 = arith.constant 0 : index
      %13 = vector.load %arg7[%c0_11, %c0_12] : memref<512x128xf32, #tpu.memory_space<vmem>>, vector<512x128xf32>
      tpu.vector_store %arg7[%c0_11, %c0_12], %12 {strides = array<i32>} : memref<512x128xf32, #tpu.memory_space<vmem>>, vector<512x128xf32>,
    } else {
    }
    %c0 = arith.constant 0 : index
    %c0_1 = arith.constant 0 : index
    %3 = vector.load %arg7[%c0, %c0_1] : memref<512x128xf32, #tpu.memory_space<vmem>>, vector<512x128xf32>
    %c0_2 = arith.constant 0 : index
    %c0_3 = arith.constant 0 : index
    %4 = vector.load %arg3[%c0_2, %c0_3] : memref<512x128xbf16, #tpu.memory_space<vmem>>, vector<512x128xbf16>
    %c0_4 = arith.constant 0 : index
    %c0_5 = arith.constant 0 : index
    %5 = vector.load %arg4[%c0_4, %c0_5] : memref<128x128xbf16, #tpu.memory_space<vmem>>, vector<128x128xbf16>
    %cst = arith.constant dense<0.000000e+00> : vector<512x128xf32>
    %6 = tpu.matmul %4, %5, %cst {dimension_numbers = #tpu.dot_dimension_numbers<[1], [0], [0], [1], [0, 0, 1, 1], [], []>} : vector<512x128xbf16>, vector<128x128xbf16>, vector<512x128xf32> -> vector<512x128xf32>
    %7 = arith.addf %3, %6 : vector<512x128xf32>
    %c0_6 = arith.constant 0 : index
    %c0_7 = arith.constant 0 : index
    %8 = vector.load %arg7[%c0_6, %c0_7] : memref<512x128xf32, #tpu.memory_space<vmem>>, vector<512x128xf32>
    tpu.vector_store %arg7[%c0_6, %c0_7], %7 {strides = array<i32>} : memref<512x128xf32, #tpu.memory_space<vmem>>, vector<512x128xf32>,
    %c0_i32_8 = arith.constant 0 : i32
    %9 = arith.cmpi eq, %arg2, %c0_i32_8 : i32
    %10 = arith.extui %9 : i1 to i32
    %c0_i32_9 = arith.constant 0 : i32
    %11 = arith.cmpi ne, %10, %c0_i32_9 : i32
    scf.if %11 {
      %c0_10 = arith.constant 0 : index
      %c0_11 = arith.constant 0 : index
      %12 = vector.load %arg7[%c0_10, %c0_11] : memref<512x128xf32, #tpu.memory_space<vmem>>, vector<512x128xf32>
      %c0_12 = arith.constant 0 : index
      %c0_13 = arith.constant 0 : index
      %13 = vector.load %arg5[%c0_12, %c0_13] : memref<1x128xf32, #tpu.memory_space<vmem>>, vector<1x128xf32>
      %14 = vector.broadcast %13 : vector<1x128xf32> to vector<512x128xf32>
      %15 = arith.addf %12, %14 : vector<512x128xf32>
      %c0_14 = arith.constant 0 : index
      %c0_15 = arith.constant 0 : index
      %16 = vector.load %arg6[%c0_14, %c0_15] : memref<512x128xf32, #tpu.memory_space<vmem>>, vector<512x128xf32>
      tpu.vector_store %arg6[%c0_14, %c0_15], %15 {strides = array<i32>} : memref<512x128xf32, #tpu.memory_space<vmem>>, vector<512x128xf32>,
    } else {
    }
    return
  }
  func.func @transform_0(%arg0: i32, %arg1: i32, %arg2: i32) -> (i32, i32) {
    %c0_i32 = arith.constant 0 : i32
    return %arg0, %arg2 : i32, i32
  }
  func.func @transform_1(%arg0: i32, %arg1: i32, %arg2: i32) -> (i32, i32) {
    %c0_i32 = arith.constant 0 : i32
    return %arg2, %arg1 : i32, i32
  }
  func.func @transform_2(%arg0: i32, %arg1: i32, %arg2: i32) -> (i32, i32) {
    %c0_i32 = arith.constant 0 : i32
    %c0_i32_0 = arith.constant 0 : i32
    return %c0_i32, %arg1 : i32, i32
  }
  func.func @transform_3(%arg0: i32, %arg1: i32, %arg2: i32) -> (i32, i32) {
    %c0_i32 = arith.constant 0 : i32
    return %arg0, %arg1 : i32, i32
  }
}

</mosaic_0001>

<bundles_post_ra>
// kernel: tpu_custom_call.1
= control target key start
LH: loop header
LB: loop body
LE: loop exit
PB: predicated region body
PF: predicated region fallthrough
CT: control target
= control target key end

     0   :  { %8 = vsyncpa [#allocation4], 0  ;;  %s2409_s0 = inlined_call_operand.hbm [shape: bf16[4096,128], index: 0, kind: input, shape index: {}]   ;;  %s2410_s1 = inlined_call_operand.hbm [shape: bf16[128,128], index: 1, kind: input, shape index: {}]   ;;  %s2411_s2 = inlined_call_operand.hbm [shape: f32[1,128], index: 2, kind: input, shape index: {}]   ;;  %s2412_s3 = inlined_call_operand.hbm [shape: f32[4096,128], index: 3, kind: output, shape index: {}]  }
   0x1   :  { %10 = vsyncpa [#allocation4 + $0x1], 0 }
   0x2   :  { %11 = vsyncpa [#allocation7], 0 }
   0x3   :  { %12 = vsyncpa [#allocation5], 0 }
   0x4   :  { %14 = vsyncpa [#allocation5 + $0x1], 0  ;;  %s1988_s12 = smov 0   ;;  %s1990_s13 = smov 0  }
   0x5   :  { %s1992_s14 = smov 0   ;;  %s1994_s15 = smov 0  }
   0x6   :  { %s1996_s16 = smov 0   ;;  %s1998_s17 = smov 0  }
   0x7 LB: > { %s1461_s18 = sadd.s32 4294967295, %s1958_s17   ;;  %s1462_s19 = sadd.s32 4294967294, %s1958_s17   ;;  %s1958_s17 = sphi %s1998_s17, %s20_s17   ;;  %s1954_s16 = sphi %s1996_s16, %s2434_s16   ;;  %s1950_s15 = sphi %s1994_s15, %s2433_s15   ;;  %s1946_s14 = sphi %s1992_s14, %s2432_s14   ;;  %s1942_s13 = sphi %s1990_s13, %s2431_s13   ;;  %s1938_s12 = sphi %s1988_s12, %s2430_s12  }
   0x8   : > { %p61_p0 = scmp.ne.s32.totalorder %s1942_s13, %s1938_s12  ;;  %p2022_p1 = scmp.eq.s32.totalorder %s1461_s18, 0 }
   0x9   : > { %p2026_p2 = scmp.eq.s32.totalorder %s1461_s18, 7  ;;  %p147_p3 = scmp.eq.s32.totalorder %s1462_s19, 7 }
   0xa   : > { %s2417_s20 = scalar_select %p2022_p1, 1, 0 }
   0xb   : > { %s2418_s21 = scalar_select %p2026_p2, 1, 0 }
   0xc   : > { %p2032_p4 = por %p2022_p1, %p61_p0  ;;  %p1463_p5 = scmp.ge.s32.totalorder %s1958_s17, 1 }
   0xd   : > { %p2037_p6 = por %p147_p3, %p61_p0  ;;  %p154_p7 = scmp.lt.s32.totalorder %s1958_s17, 9 }
   0xe   : > { %s2419_s22 = scalar_select %p2032_p4, 1, 0 }
   0xf   : > { %s2420_s23 = scalar_select %p2037_p6, 1, 0 }
  0x10   : > { %p2042_p8 = pnand %p1463_p5, %p154_p7  ;;  %s1960_s25 = smov [#allocation6]  }
  0x11   : > { %s170_s26 = sshll.u32 %s1960_s25, 4  ;;  %s1961_s28 = smov [#allocation8]   ;;  %s171_s26 = int_to_ptr.vmem [resolvable:$true] %s170_s26 }
  0x12   : > { %s2421_s24 = scalar_select %p2042_p8, 1, 0 }
  0x13   : > { %p1671_p9 = pneg %p2042_p8  ;;  %s186_s29 = sshll.u32 %s1961_s28, 4  ;;  %s2054_s29 = int_to_ptr.vmem [resolvable:$true] %s186_s29 }
  0x14   : > { %s1786_s5 = scalar_lea.hbm %s2410_s1, 1024 }
  0x15   : > { %p2050_p10 = pnand %p1671_p9, %p2022_p1  ;;  %p1787_p11 = scmp.ne.s32.totalorder %s2410_s1, %s1786_s5 }
  0x16   : > { %p1793_p3 = scmp.lt.u32.totalorder %s1786_s5, %s2410_s1 }
  0x17   : > { %p1788_p12 = pneg %p2050_p10 }
  0x19   : > { %p1789_p13 = pnand %p1788_p12, %p1787_p11 }
  0x1b   : > { %p1790_p0 = pneg %p1789_p13 }
  0x1d   : > { %p1795_p5 = pnand %p1793_p3, %p1790_p0 }
  0x1f   : > { %1798 = shalt.err (!%p1795_p5)
}
  0x20   : > { %s1799_s10 = scalar_lea.vmem %s171_s26, 1024  ;;  %p1807_p1 = scmp.lt.s32.totalorder %s171_s26, %s171_s26 }
  0x21   : > { %p1800_p7 = scmp.ne.s32.totalorder %s171_s26, %s1799_s10  ;;  %p1808_p4 = scmp.lt.s32.totalorder %s1799_s10, %s1799_s10 }
  0x23   : > { %p1802_p9 = pnand %p1800_p7, %p1788_p12  ;;  %p1809_p8 = por %p1808_p4, %p1807_p1 }
  0x25   : > { %p1803_p6 = pneg %p1802_p9 }
  0x27   : > { %p1810_p2 = pnand %p1809_p8, %p1803_p6 }
  0x29   : > { %1813 = shalt.err (!%p1810_p2)
}
  0x2a   : > { %s1962_s11 = smov 64   ;;  %s1963_s18 = smov 4  }
  0x2b   : > { %1674 = dma.hbm_to_vmem [thread:$0]  (!%p2050_p10), %s2410_s1, 1024, %s171_s26, [#allocation7], %s1962_s11, %s1962_s11, %s1963_s18  }
  0x2c   : > { %s1814_s4 = scalar_lea.hbm %s2411_s2, 16 }
  0x2d   : > { %p1815_p1 = scmp.ne.s32.totalorder %s2411_s2, %s1814_s4  ;;  %p1821_p6 = scmp.lt.u32.totalorder %s1814_s4, %s2411_s2 }
  0x2f   : > { %p1817_p2 = pnand %p1815_p1, %p1788_p12 }
  0x31   : > { %p1818_p4 = pneg %p1817_p2 }
  0x33   : > { %p1823_p8 = pnand %p1821_p6, %p1818_p4 }
  0x35   : > { %1826 = shalt.err (!%p1823_p8)
}
  0x36   : > { %s1827_s26 = scalar_lea.vmem %s2054_s29, 16  ;;  %s1834_s9 = scalar_lea.vmem %s2054_s29, 32 }
  0x37   : > { %p1828_p11 = scmp.ne.s32.totalorder %s2054_s29, %s1827_s26  ;;  %p1835_p3 = scmp.lt.s32.totalorder %s2054_s29, %s2054_s29 }
  0x38   : > { %p1836_p5 = scmp.lt.s32.totalorder %s1834_s9, %s1827_s26 }
  0x39   : > { %p1830_p13 = pnand %p1828_p11, %p1788_p12 }
  0x3a   : > { %p1837_p7 = por %p1836_p5, %p1835_p3 }
  0x3b   : > { %p1831_p0 = pneg %p1830_p13 }
  0x3d   : > { %p1838_p9 = pnand %p1837_p7, %p1831_p0 }
  0x3f   : > { %1841 = shalt.err (!%p1838_p9)
}
  0x40   : > { %1677 = dma.hbm_to_vmem [thread:$0]  (!%p2050_p10), %s2411_s2, 16, %s2054_s29, [#allocation7]  }
  0x41   : > { %s39_s25 = sadd.s32 1, %s1954_s16  ;;  %s48_s28 = sadd.s32 1, %s1946_s14 }
  0x42   : > { %p41_p12 = scmp.ge.s32.totalorder %s39_s25, 8  ;;  %p55_p1 = scmp.ne.s32.totalorder %s1946_s14, %s1942_s13 }
  0x43   : > { %p56_p2 = scmp.eq.s32.totalorder %s1958_s17, 0  ;;  %p1688_p4 = scmp.lt.s32.totalorder %s1958_s17, 8 }
  0x44   : > { %s2436_s25 = smov (%p41_p12, %s39_s25), 0  ;;  %p2423_p8 = scmp.ne.s32.totalorder %s2418_s21, 0 }
  0x45   : > { %p57_p6 = por %p56_p2, %p55_p1  ;;  %s43_s30 = ssub.s32 %s1954_s16, %s2436_s25 }
  0x46   : > { %p2117_p11 = por %p2423_p8, %p55_p1  ;;  %s197_s4 = sand.u32 1, %s1946_s14  }
  0x47   : > { %p46_p13 = scmp.eq.s32.totalorder %s43_s30, 0  ;;  %s1467_s29 = sshll.u32 %s197_s4, 8 }
  0x48   : > { %s1521_s5 = sshll.u32 %s1954_s16, 12  ;;  %s201_s21 = scalar_lea.vmem [#allocation3], %s1467_s29 }
  0x49   : > { %s2126_s6 = scalar_select %p46_p13, %s1946_s14, %s48_s28  }
  0x4a   : > { %s2131_s26 = scalar_lea.hbm %s2409_s0, %s1521_s5  ;;  %s209_s9 = sshll.u32 %s201_s21, 4  ;;  %s2139_s9 = int_to_ptr.vmem [resolvable:$true] %s209_s9 }
  0x4b   : > { %p2135_p10 = pnand %p1688_p4, %p57_p6  ;;  %s2141_s19 = scalar_lea.sflag [#allocation4], %s197_s4 }
  0x4c   : > { %s1842_s28 = scalar_lea.hbm %s2131_s26, 4096  ;;  %s1847_s5 = scalar_lea.hbm %s2409_s0, 32768 }
  0x4d   : > { %p1843_p0 = scmp.ne.s32.totalorder %s2131_s26, %s1842_s28  ;;  %p1844_p3 = pneg %p2135_p10 }
  0x4e   : > { %p1848_p9 = scmp.lt.u32.totalorder %s2131_s26, %s2409_s0  ;;  %p1849_p12 = scmp.lt.u32.totalorder %s1847_s5, %s1842_s28 }
  0x4f   : > { %p1845_p5 = pnand %p1844_p3, %p1843_p0  ;;  %p1851_p2 = scmp.lt.u32.totalorder %s1842_s28, %s2131_s26 }
  0x50   : > { %p1850_p1 = por %p1849_p12, %p1848_p9 }
  0x51   : > { %p1846_p7 = pneg %p1845_p5 }
  0x52   : > { %p1852_p4 = por %p1851_p2, %p1850_p1 }
  0x54   : > { %p1853_p6 = pnand %p1852_p4, %p1846_p7 }
  0x56   : > { %1856 = shalt.err (!%p1853_p6)
}
  0x57   : > { %s1857_s4 = scalar_lea.vmem %s2139_s9, 4096  ;;  %s1964_s21 = smov [#allocation3]  }
  0x58   : > { %p1858_p8 = scmp.ne.s32.totalorder %s2139_s9, %s1857_s4  ;;  %s1862_s30 = sshll.u32 %s1964_s21, 4  ;;  %s1863_s30 = int_to_ptr.vmem [resolvable:$false] %s1862_s30 }
  0x59   : > { %s1864_s29 = scalar_lea.vmem %s1863_s30, 8192  ;;  %p1865_p5 = scmp.lt.s32.totalorder %s2139_s9, %s1863_s30 }
  0x5a   : > { %p1860_p13 = pnand %p1858_p8, %p1844_p3  ;;  %p1866_p9 = scmp.lt.s32.totalorder %s1864_s29, %s1857_s4 }
  0x5c   : > { %p1861_p0 = pneg %p1860_p13  ;;  %p1867_p12 = por %p1866_p9, %p1865_p5 }
  0x5e   : > { %p1868_p1 = pnand %p1867_p12, %p1861_p0 }
  0x60   : > { %1871 = shalt.err (!%p1868_p1)
}
  0x61   : > { %1681 = dma.hbm_to_vmem [thread:$0]  (!%p2135_p10), %s2131_s26, 4096, %s2139_s9, %s2141_s19, %s1962_s11, %s1962_s11, %s1963_s18  }
  0x62   : > { %p2426_p3 = scmp.ne.s32.totalorder %s2421_s24, 0 }
  0x63   : > { %s2175_s28 = sand.u32 (!%p2426_p3), 1, %s1942_s13   ;;  %p2427_p7 = scmp.ne.s32.totalorder (!%p2426_p3), %s2419_s22, 0 }
  0x64   : > { %221 = sbr.rel (%p2426_p3) target bundleno = 432 (0x1b0), region = 32  ;;  %s1471_s5 = sshll.u32 (!%p2426_p3), %s2175_s28, 8 }
  0x65   : > { %s224_s7 = scalar_lea.sflag (!%p2426_p3), [#allocation4], %s2175_s28  ;;  %s2179_s8 = scalar_lea.vmem (!%p2426_p3), [#allocation3], %s1471_s5 }
  0x6b   : > { %1925 = dma.done.wait (%p2427_p7), %s224_s7, 4096  }
  0x6c   : > { %1927 = vsyncadd (%p2427_p7), %s224_s7, 4294963200  ;;  %p2428_p10 = scmp.ne.s32.totalorder %s2417_s20, 0 }
  0x6e   : > { %1929 = dma.done.wait (%p2428_p10), [#allocation7], 1040  }
  0x6f   : > { %1931 = vsyncadd (%p2428_p10), [#allocation7], 4294966256  ;;  %v1746_v0 = vld [vmem:[#allocation6] sm:$0xff]   ;;  %v1747_v1 = vld [vmem:[#allocation6 + $0x8] sm:$0xff]   ;;  %s1474_s20 = sshll.u32 %s2175_s28, 9  ;;  %s1522_s24 = sshll.u32 %s1950_s15, 13 }
  0x70   : > { %1563 = vmatprep.subr.bf16.mxu0 %v1746_v0  ;;  %1643 = vmatprep.subr.bf16.mxu1 %v1746_v0  ;;  %v1748_v2 = vld [vmem:[#allocation6 + $0x10] sm:$0xff]   ;;  %v1749_v3 = vld [vmem:[#allocation6 + $0x18] sm:$0xff]   ;;  %v1754_v4 = vld [vmem:[%s2179_s8] sm:$0xff]   ;;  %s2228_s22 = scalar_lea.vmem [#allocation9], %s1474_s20  ;;  %s2351_s26 = scalar_lea.hbm %s2412_s3, %s1522_s24 }
  0x71   : > { %1564 = vmatpush3.bf16.msra.mxu0 %v1746_v0  ;;  %1651 = vmatpush3.bf16.msra.mxu1 %v1746_v0  ;;  %v1755_v5 = vld [vmem:[%s2179_s8 + $0x80] sm:$0xff]   ;;  %v1751_v7 = vld [vmem:[#allocation6 + $0x28] sm:$0xff]   ;;  %v1752_v8 = vld [vmem:[#allocation6 + $0x30] sm:$0xff]   ;;  %s1348_s11 = sshll.u32 %s2228_s22, 4  ;;  %s1334_s9 = scalar_lea.sflag [#allocation5], %s2175_s28  ;;  %s2353_s11 = int_to_ptr.vmem [resolvable:$true] %s1348_s11 }
  0x72   : > { %1565 = vmatprep.subr.bf16.mxu0 %v1747_v1  ;;  %1644 = vmatprep.subr.bf16.mxu1 %v1747_v1  ;;  %v1750_v6 = vld [vmem:[#allocation6 + $0x20] sm:$0xff]   ;;  %v1753_v9 = vld [vmem:[#allocation6 + $0x38] sm:$0xff]   ;;  %v1756_v10 = vld [vmem:[%s2179_s8 + $0x8] sm:$0xff]   ;;  %s1872_s10 = scalar_lea.vmem %s2353_s11, 8192  ;;  %s1965_s19 = smov [#allocation9]  }
  0x73   : > { %1579 = vmatprep.mubr.bf16.mxu0 %v1754_v4  ;;  %1611 = vmatprep.mubr.bf16.mxu1 %v1755_v5  ;;  %v1757_v11 = vld [vmem:[%s2179_s8 + $0x88] sm:$0xff]   ;;  %v1758_v12 = vld [vmem:[%s2179_s8 + $0x10] sm:$0xff]   ;;  %v1760_v14 = vld [vmem:[%s2179_s8 + $0x18] sm:$0xff]   ;;  %p1873_p2 = scmp.ne.s32.totalorder %s2353_s11, %s1872_s10  ;;  %s1876_s4 = sshll.u32 %s1965_s19, 4  ;;  %s1877_s4 = int_to_ptr.vmem [resolvable:$false] %s1876_s4 }
  0x74   : > { %v1759_v13 = vld [vmem:[%s2179_s8 + $0x90] sm:$0xff]   ;;  %v1761_v15 = vld [vmem:[%s2179_s8 + $0x98] sm:$0xff]   ;;  %v1762_v16 = vld [vmem:[%s2179_s8 + $0x20] sm:$0xff]   ;;  %s1878_s21 = scalar_lea.vmem %s1877_s4, 16384  ;;  %p1879_p8 = scmp.lt.s32.totalorder %s2353_s11, %s1877_s4 }
  0x75   : > { %1566 = vmatpush3.bf16.msra.mxu0 %v1747_v1  ;;  %1652 = vmatpush3.bf16.msra.mxu1 %v1747_v1  ;;  %v1763_v17 = vld [vmem:[%s2179_s8 + $0xa0] sm:$0xff]   ;;  %v1764_v18 = vld [vmem:[%s2179_s8 + $0x28] sm:$0xff]   ;;  %v1766_v20 = vld [vmem:[%s2179_s8 + $0x30] sm:$0xff]   ;;  %p1874_p4 = pnand %p1873_p2, %p2117_p11  ;;  %p1880_p13 = scmp.lt.s32.totalorder %s1878_s21, %s1872_s10 }
  0x76   : > { %1567 = vmatprep.subr.bf16.mxu0 %v1748_v2  ;;  %1645 = vmatprep.subr.bf16.mxu1 %v1748_v2  ;;  %v1765_v19 = vld [vmem:[%s2179_s8 + $0xa8] sm:$0xff]   ;;  %v1767_v21 = vld [vmem:[%s2179_s8 + $0xb0] sm:$0xff]   ;;  %v1768_v22 = vld [vmem:[%s2179_s8 + $0x38] sm:$0xff]  }
  0x77   : > { %v1769_v23 = vld [vmem:[%s2179_s8 + $0xb8] sm:$0xff]   ;;  %v1770_v24 = vld [vmem:[%s2179_s8 + $0x40] sm:$0xff]   ;;  %v1772_v26 = vld [vmem:[%s2179_s8 + $0x48] sm:$0xff]   ;;  %p1875_p6 = pneg %p1874_p4  ;;  %p1881_p0 = por %p1880_p13, %p1879_p8 }
  0x78   : > { %v1771_v25 = vld [vmem:[%s2179_s8 + $0xc0] sm:$0xff]   ;;  %v1773_v27 = vld [vmem:[%s2179_s8 + $0xc8] sm:$0xff]   ;;  %v1774_v28 = vld [vmem:[%s2179_s8 + $0x50] sm:$0xff]  }
  0x79   : > { %1568 = vmatpush3.bf16.msra.mxu0 %v1748_v2  ;;  %1653 = vmatpush3.bf16.msra.mxu1 %v1748_v2  ;;  %v1775_v29 = vld [vmem:[%s2179_s8 + $0xd0] sm:$0xff]   ;;  %v1776_v30 = vld [vmem:[%s2179_s8 + $0x58] sm:$0xff]   ;;  %v1778_v32 = vld [vmem:[%s2179_s8 + $0x60] sm:$0xff]   ;;  %p1882_p5 = pnand %p1881_p0, %p1875_p6 }
  0x7a   : > { %1569 = vmatprep.subr.bf16.mxu0 %v1749_v3  ;;  %1646 = vmatprep.subr.bf16.mxu1 %v1749_v3  ;;  %v1777_v31 = vld [vmem:[%s2179_s8 + $0xd8] sm:$0xff]   ;;  %v1779_v33 = vld [vmem:[%s2179_s8 + $0xe0] sm:$0xff]   ;;  %v1780_v34 = vld [vmem:[%s2179_s8 + $0x68] sm:$0xff]  }
  0x7b   : > { %v1781_v35 = vld [vmem:[%s2179_s8 + $0xe8] sm:$0xff]   ;;  %v1782_v36 = vld [vmem:[%s2179_s8 + $0x70] sm:$0xff]   ;;  %v1784_v38 = vld [vmem:[%s2179_s8 + $0x78] sm:$0xff]  }
  0x7c   : > { %v1783_v37 = vld [vmem:[%s2179_s8 + $0xf0] sm:$0xff]   ;;  %v1785_v39 = vld [vmem:[%s2179_s8 + $0xf8] sm:$0xff]   ;;  %v2222_v40 = vld [vmem:[#allocation8] ss:$0 sm:$0xff] }
  0x7d   : > { %1570 = vmatpush3.bf16.msra.mxu0 %v1749_v3  ;;  %1654 = vmatpush3.bf16.msra.mxu1 %v1749_v3 }
  0x7e   : > { %1571 = vmatprep.subr.bf16.mxu0 %v1750_v6  ;;  %1647 = vmatprep.subr.bf16.mxu1 %v1750_v6 }
  0x81   : > { %1572 = vmatpush3.bf16.msra.mxu0 %v1750_v6  ;;  %1655 = vmatpush3.bf16.msra.mxu1 %v1750_v6 }
  0x82   : > { %1573 = vmatprep.subr.bf16.mxu0 %v1751_v7  ;;  %1648 = vmatprep.subr.bf16.mxu1 %v1751_v7 }
  0x85   : > { %1574 = vmatpush3.bf16.msra.mxu0 %v1751_v7  ;;  %1656 = vmatpush3.bf16.msra.mxu1 %v1751_v7 }
  0x86   : > { %1575 = vmatprep.subr.bf16.mxu0 %v1752_v8  ;;  %1649 = vmatprep.subr.bf16.mxu1 %v1752_v8 }
  0x89   : > { %1576 = vmatpush3.bf16.msra.mxu0 %v1752_v8  ;;  %1657 = vmatpush3.bf16.msra.mxu1 %v1752_v8 }
  0x8a   : > { %1577 = vmatprep.subr.bf16.mxu0 %v1753_v9  ;;  %1650 = vmatprep.subr.bf16.mxu1 %v1753_v9 }
  0x8d   : > { %1578 = vmatpush3.bf16.msra.mxu0 %v1753_v9  ;;  %1658 = vmatpush3.bf16.msra.mxu1 %v1753_v9 }
  0x90   : > { %1580 = vmatmul.mubr.bf16.vlgmr.msra.gmra.mrb[0].mxu0 %v1756_v10  ;;  %1612 = vmatmul.mubr.bf16.vlgmr.msra.gmra.mrb[0].mxu1 %v1757_v11 }
  0x91   : > { %1583 = vmatprep.mubr.bf16.mxu0 %v1758_v12  ;;  %1615 = vmatprep.mubr.bf16.mxu1 %v1759_v13 }
  0x98   : > { %1584 = vmatmul.mubr.bf16.gmra.mrb[4].mxu0 %v1760_v14  ;;  %1616 = vmatmul.mubr.bf16.gmra.mrb[4].mxu1 %v1761_v15 }
  0x99   : > { %1587 = vmatprep.mubr.bf16.mxu0 %v1762_v16  ;;  %1619 = vmatprep.mubr.bf16.mxu1 %v1763_v17 }
  0xa0   : > { %1588 = vmatmul.mubr.bf16.gmra.mrb[8].mxu0 %v1764_v18  ;;  %1620 = vmatmul.mubr.bf16.gmra.mrb[8].mxu1 %v1765_v19 }
  0xa1   : > { %1591 = vmatprep.mubr.bf16.mxu0 %v1766_v20  ;;  %1623 = vmatprep.mubr.bf16.mxu1 %v1767_v21 }
  0xa8   : > { %1592 = vmatmul.mubr.bf16.gmra.mrb[12].mxu0 %v1768_v22  ;;  %1624 = vmatmul.mubr.bf16.gmra.mrb[12].mxu1 %v1769_v23 }
  0xa9   : > { %1595 = vmatprep.mubr.bf16.mxu0 %v1770_v24  ;;  %1627 = vmatprep.mubr.bf16.mxu1 %v1771_v25 }
  0xb0   : > { %1596 = vmatmul.mubr.bf16.gmra.mrb[16].mxu0 %v1772_v26  ;;  %1628 = vmatmul.mubr.bf16.gmra.mrb[16].mxu1 %v1773_v27 }
  0xb1   : > { %1599 = vmatprep.mubr.bf16.mxu0 %v1774_v28  ;;  %1631 = vmatprep.mubr.bf16.mxu1 %v1775_v29 }
  0xb8   : > { %1600 = vmatmul.mubr.bf16.gmra.mrb[20].mxu0 %v1776_v30  ;;  %1632 = vmatmul.mubr.bf16.gmra.mrb[20].mxu1 %v1777_v31 }
  0xb9   : > { %1603 = vmatprep.mubr.bf16.mxu0 %v1778_v32  ;;  %1635 = vmatprep.mubr.bf16.mxu1 %v1779_v33 }
  0xc0   : > { %1604 = vmatmul.mubr.bf16.gmra.mrb[24].mxu0 %v1780_v34  ;;  %1636 = vmatmul.mubr.bf16.gmra.mrb[24].mxu1 %v1781_v35 }
  0xc1   : > { %1607 = vmatprep.mubr.bf16.mxu0 %v1782_v36  ;;  %1639 = vmatprep.mubr.bf16.mxu1 %v1783_v37 }
  0xc8   : > { %1608 = vmatmul.mubr.bf16.gmra.mrb[28].mxu0 %v1784_v38  ;;  %1640 = vmatmul.mubr.bf16.gmra.mrb[28].mxu1 %v1785_v39 }
 0x163   : > { %v1581_v41 = vpop.f32.mrb[0].mxu0  ;;  %v1613_v42 = vpop.f32.mrb[0].mxu1 }
 0x164   : > { %v1207_v43 = vadd.f32 %v1581_v41, %v2222_v40  ;;  %v1239_v44 = vadd.f32 %v1613_v42, %v2222_v40  ;;  %v748_v45 = vpop.f32.mrb[1].mxu0  ;;  %v876_v46 = vpop.f32.mrb[1].mxu1 }
 0x165   : > { %v1205_v47 = vadd.f32 %v2222_v40, %v748_v45  ;;  %v1237_v48 = vadd.f32 %v2222_v40, %v876_v46  ;;  %v1582_v49 = vpop.f32.mrb[2].mxu0  ;;  %v1614_v50 = vpop.f32.mrb[2].mxu1 }
 0x166   : > { %1271 = vst [vmem:[%s2228_s22 + $0x10] sm:$0xff] %v1207_v43  ;;  %1303 = vst [vmem:[%s2228_s22 + $0x110] sm:$0xff] %v1239_v44  ;;  %v1208_v51 = vadd.f32 %v1582_v49, %v2222_v40  ;;  %v1240_v52 = vadd.f32 %v1614_v50, %v2222_v40  ;;  %v751_v53 = vpop.f32.mrb[3].mxu0  ;;  %v879_v54 = vpop.f32.mrb[3].mxu1 }
 0x167   : > { %1269 = vst [vmem:[%s2228_s22] sm:$0xff] %v1205_v47  ;;  %1301 = vst [vmem:[%s2228_s22 + $0x100] sm:$0xff] %v1237_v48  ;;  %v1206_v55 = vadd.f32 %v2222_v40, %v751_v53  ;;  %v1238_v56 = vadd.f32 %v2222_v40, %v879_v54 }
 0x168   : > { %1272 = vst [vmem:[%s2228_s22 + $0x18] sm:$0xff] %v1208_v51  ;;  %1304 = vst [vmem:[%s2228_s22 + $0x118] sm:$0xff] %v1240_v52 }
 0x169   : > { %1270 = vst [vmem:[%s2228_s22 + $0x8] sm:$0xff] %v1206_v55  ;;  %1302 = vst [vmem:[%s2228_s22 + $0x108] sm:$0xff] %v1238_v56 }
 0x16b   : > { %v1585_v57 = vpop.f32.mrb[4].mxu0  ;;  %v1617_v58 = vpop.f32.mrb[4].mxu1 }
 0x16c   : > { %v1211_v59 = vadd.f32 %v1585_v57, %v2222_v40  ;;  %v1243_v60 = vadd.f32 %v1617_v58, %v2222_v40  ;;  %v764_v61 = vpop.f32.mrb[5].mxu0  ;;  %v892_v62 = vpop.f32.mrb[5].mxu1 }
 0x16d   : > { %v1209_v63 = vadd.f32 %v2222_v40, %v764_v61  ;;  %v1241_v0 = vadd.f32 %v2222_v40, %v892_v62  ;;  %v1586_v1 = vpop.f32.mrb[6].mxu0  ;;  %v1618_v2 = vpop.f32.mrb[6].mxu1 }
 0x16e   : > { %1275 = vst [vmem:[%s2228_s22 + $0x30] sm:$0xff] %v1211_v59  ;;  %1307 = vst [vmem:[%s2228_s22 + $0x130] sm:$0xff] %v1243_v60  ;;  %v1212_v3 = vadd.f32 %v1586_v1, %v2222_v40  ;;  %v1244_v4 = vadd.f32 %v1618_v2, %v2222_v40  ;;  %v767_v5 = vpop.f32.mrb[7].mxu0  ;;  %v895_v6 = vpop.f32.mrb[7].mxu1 }
 0x16f   : > { %1273 = vst [vmem:[%s2228_s22 + $0x20] sm:$0xff] %v1209_v63  ;;  %1305 = vst [vmem:[%s2228_s22 + $0x120] sm:$0xff] %v1241_v0  ;;  %v1210_v7 = vadd.f32 %v2222_v40, %v767_v5  ;;  %v1242_v8 = vadd.f32 %v2222_v40, %v895_v6 }
 0x170   : > { %1276 = vst [vmem:[%s2228_s22 + $0x38] sm:$0xff] %v1212_v3  ;;  %1308 = vst [vmem:[%s2228_s22 + $0x138] sm:$0xff] %v1244_v4 }
 0x171   : > { %1274 = vst [vmem:[%s2228_s22 + $0x28] sm:$0xff] %v1210_v7  ;;  %1306 = vst [vmem:[%s2228_s22 + $0x128] sm:$0xff] %v1242_v8 }
 0x173   : > { %v1589_v9 = vpop.f32.mrb[8].mxu0  ;;  %v1621_v10 = vpop.f32.mrb[8].mxu1 }
 0x174   : > { %v1215_v11 = vadd.f32 %v1589_v9, %v2222_v40  ;;  %v1247_v12 = vadd.f32 %v1621_v10, %v2222_v40  ;;  %v780_v13 = vpop.f32.mrb[9].mxu0  ;;  %v908_v14 = vpop.f32.mrb[9].mxu1 }
 0x175   : > { %v1213_v15 = vadd.f32 %v2222_v40, %v780_v13  ;;  %v1245_v16 = vadd.f32 %v2222_v40, %v908_v14  ;;  %v1590_v17 = vpop.f32.mrb[10].mxu0  ;;  %v1622_v18 = vpop.f32.mrb[10].mxu1 }
 0x176   : > { %1279 = vst [vmem:[%s2228_s22 + $0x50] sm:$0xff] %v1215_v11  ;;  %1311 = vst [vmem:[%s2228_s22 + $0x150] sm:$0xff] %v1247_v12  ;;  %v1216_v19 = vadd.f32 %v1590_v17, %v2222_v40  ;;  %v1248_v20 = vadd.f32 %v1622_v18, %v2222_v40  ;;  %v783_v21 = vpop.f32.mrb[11].mxu0  ;;  %v911_v22 = vpop.f32.mrb[11].mxu1 }
 0x177   : > { %1277 = vst [vmem:[%s2228_s22 + $0x40] sm:$0xff] %v1213_v15  ;;  %1309 = vst [vmem:[%s2228_s22 + $0x140] sm:$0xff] %v1245_v16  ;;  %v1214_v23 = vadd.f32 %v2222_v40, %v783_v21  ;;  %v1246_v24 = vadd.f32 %v2222_v40, %v911_v22 }
 0x178   : > { %1280 = vst [vmem:[%s2228_s22 + $0x58] sm:$0xff] %v1216_v19  ;;  %1312 = vst [vmem:[%s2228_s22 + $0x158] sm:$0xff] %v1248_v20 }
 0x179   : > { %1278 = vst [vmem:[%s2228_s22 + $0x48] sm:$0xff] %v1214_v23  ;;  %1310 = vst [vmem:[%s2228_s22 + $0x148] sm:$0xff] %v1246_v24 }
 0x17b   : > { %v1593_v25 = vpop.f32.mrb[12].mxu0  ;;  %v1625_v26 = vpop.f32.mrb[12].mxu1 }
 0x17c   : > { %v1219_v27 = vadd.f32 %v1593_v25, %v2222_v40  ;;  %v1251_v28 = vadd.f32 %v1625_v26, %v2222_v40  ;;  %v796_v29 = vpop.f32.mrb[13].mxu0  ;;  %v924_v30 = vpop.f32.mrb[13].mxu1 }
 0x17d   : > { %v1217_v31 = vadd.f32 %v2222_v40, %v796_v29  ;;  %v1249_v32 = vadd.f32 %v2222_v40, %v924_v30  ;;  %v1594_v33 = vpop.f32.mrb[14].mxu0  ;;  %v1626_v34 = vpop.f32.mrb[14].mxu1 }
 0x17e   : > { %1283 = vst [vmem:[%s2228_s22 + $0x70] sm:$0xff] %v1219_v27  ;;  %1315 = vst [vmem:[%s2228_s22 + $0x170] sm:$0xff] %v1251_v28  ;;  %v1220_v35 = vadd.f32 %v1594_v33, %v2222_v40  ;;  %v1252_v36 = vadd.f32 %v1626_v34, %v2222_v40  ;;  %v799_v37 = vpop.f32.mrb[15].mxu0  ;;  %v927_v38 = vpop.f32.mrb[15].mxu1 }
 0x17f   : > { %1281 = vst [vmem:[%s2228_s22 + $0x60] sm:$0xff] %v1217_v31  ;;  %1313 = vst [vmem:[%s2228_s22 + $0x160] sm:$0xff] %v1249_v32  ;;  %v1218_v39 = vadd.f32 %v2222_v40, %v799_v37  ;;  %v1250_v41 = vadd.f32 %v2222_v40, %v927_v38 }
 0x180   : > { %1284 = vst [vmem:[%s2228_s22 + $0x78] sm:$0xff] %v1220_v35  ;;  %1316 = vst [vmem:[%s2228_s22 + $0x178] sm:$0xff] %v1252_v36 }
 0x181   : > { %1282 = vst [vmem:[%s2228_s22 + $0x68] sm:$0xff] %v1218_v39  ;;  %1314 = vst [vmem:[%s2228_s22 + $0x168] sm:$0xff] %v1250_v41 }
 0x183   : > { %v1597_v42 = vpop.f32.mrb[16].mxu0  ;;  %v1629_v43 = vpop.f32.mrb[16].mxu1 }
 0x184   : > { %v1223_v44 = vadd.f32 %v1597_v42, %v2222_v40  ;;  %v1255_v45 = vadd.f32 %v1629_v43, %v2222_v40  ;;  %v812_v46 = vpop.f32.mrb[17].mxu0  ;;  %v940_v47 = vpop.f32.mrb[17].mxu1 }
 0x185   : > { %v1221_v48 = vadd.f32 %v2222_v40, %v812_v46  ;;  %v1253_v49 = vadd.f32 %v2222_v40, %v940_v47  ;;  %v1598_v50 = vpop.f32.mrb[18].mxu0  ;;  %v1630_v51 = vpop.f32.mrb[18].mxu1 }
 0x186   : > { %1287 = vst [vmem:[%s2228_s22 + $0x90] sm:$0xff] %v1223_v44  ;;  %1319 = vst [vmem:[%s2228_s22 + $0x190] sm:$0xff] %v1255_v45  ;;  %v1224_v52 = vadd.f32 %v1598_v50, %v2222_v40  ;;  %v1256_v53 = vadd.f32 %v1630_v51, %v2222_v40  ;;  %v815_v54 = vpop.f32.mrb[19].mxu0  ;;  %v943_v55 = vpop.f32.mrb[19].mxu1 }
 0x187   : > { %1285 = vst [vmem:[%s2228_s22 + $0x80] sm:$0xff] %v1221_v48  ;;  %1317 = vst [vmem:[%s2228_s22 + $0x180] sm:$0xff] %v1253_v49  ;;  %v1222_v56 = vadd.f32 %v2222_v40, %v815_v54  ;;  %v1254_v57 = vadd.f32 %v2222_v40, %v943_v55 }
 0x188   : > { %1288 = vst [vmem:[%s2228_s22 + $0x98] sm:$0xff] %v1224_v52  ;;  %1320 = vst [vmem:[%s2228_s22 + $0x198] sm:$0xff] %v1256_v53 }
 0x189   : > { %1286 = vst [vmem:[%s2228_s22 + $0x88] sm:$0xff] %v1222_v56  ;;  %1318 = vst [vmem:[%s2228_s22 + $0x188] sm:$0xff] %v1254_v57 }
 0x18b   : > { %v1601_v58 = vpop.f32.mrb[20].mxu0  ;;  %v1633_v59 = vpop.f32.mrb[20].mxu1 }
 0x18c   : > { %v1227_v60 = vadd.f32 %v1601_v58, %v2222_v40  ;;  %v1259_v61 = vadd.f32 %v1633_v59, %v2222_v40  ;;  %v828_v62 = vpop.f32.mrb[21].mxu0  ;;  %v956_v63 = vpop.f32.mrb[21].mxu1 }
 0x18d   : > { %v1225_v0 = vadd.f32 %v2222_v40, %v828_v62  ;;  %v1257_v1 = vadd.f32 %v2222_v40, %v956_v63  ;;  %v1602_v2 = vpop.f32.mrb[22].mxu0  ;;  %v1634_v3 = vpop.f32.mrb[22].mxu1 }
 0x18e   : > { %1291 = vst [vmem:[%s2228_s22 + $0xb0] sm:$0xff] %v1227_v60  ;;  %1323 = vst [vmem:[%s2228_s22 + $0x1b0] sm:$0xff] %v1259_v61  ;;  %v1228_v4 = vadd.f32 %v1602_v2, %v2222_v40  ;;  %v1260_v5 = vadd.f32 %v1634_v3, %v2222_v40  ;;  %v831_v6 = vpop.f32.mrb[23].mxu0  ;;  %v959_v7 = vpop.f32.mrb[23].mxu1 }
 0x18f   : > { %1289 = vst [vmem:[%s2228_s22 + $0xa0] sm:$0xff] %v1225_v0  ;;  %1321 = vst [vmem:[%s2228_s22 + $0x1a0] sm:$0xff] %v1257_v1  ;;  %v1226_v8 = vadd.f32 %v2222_v40, %v831_v6  ;;  %v1258_v9 = vadd.f32 %v2222_v40, %v959_v7 }
 0x190   : > { %1292 = vst [vmem:[%s2228_s22 + $0xb8] sm:$0xff] %v1228_v4  ;;  %1324 = vst [vmem:[%s2228_s22 + $0x1b8] sm:$0xff] %v1260_v5 }
 0x191   : > { %1290 = vst [vmem:[%s2228_s22 + $0xa8] sm:$0xff] %v1226_v8  ;;  %1322 = vst [vmem:[%s2228_s22 + $0x1a8] sm:$0xff] %v1258_v9 }
 0x193   : > { %v1605_v10 = vpop.f32.mrb[24].mxu0  ;;  %v1637_v11 = vpop.f32.mrb[24].mxu1 }
 0x194   : > { %v1231_v12 = vadd.f32 %v1605_v10, %v2222_v40  ;;  %v1263_v13 = vadd.f32 %v1637_v11, %v2222_v40  ;;  %v844_v14 = vpop.f32.mrb[25].mxu0  ;;  %v972_v15 = vpop.f32.mrb[25].mxu1 }
 0x195   : > { %v1229_v16 = vadd.f32 %v2222_v40, %v844_v14  ;;  %v1261_v17 = vadd.f32 %v2222_v40, %v972_v15  ;;  %v1606_v18 = vpop.f32.mrb[26].mxu0  ;;  %v1638_v19 = vpop.f32.mrb[26].mxu1 }
 0x196   : > { %1295 = vst [vmem:[%s2228_s22 + $0xd0] sm:$0xff] %v1231_v12  ;;  %1327 = vst [vmem:[%s2228_s22 + $0x1d0] sm:$0xff] %v1263_v13  ;;  %v1232_v20 = vadd.f32 %v1606_v18, %v2222_v40  ;;  %v1264_v21 = vadd.f32 %v1638_v19, %v2222_v40  ;;  %v847_v22 = vpop.f32.mrb[27].mxu0  ;;  %v975_v23 = vpop.f32.mrb[27].mxu1 }
 0x197   : > { %1293 = vst [vmem:[%s2228_s22 + $0xc0] sm:$0xff] %v1229_v16  ;;  %1325 = vst [vmem:[%s2228_s22 + $0x1c0] sm:$0xff] %v1261_v17  ;;  %v1230_v24 = vadd.f32 %v2222_v40, %v847_v22  ;;  %v1262_v25 = vadd.f32 %v2222_v40, %v975_v23 }
 0x198   : > { %1296 = vst [vmem:[%s2228_s22 + $0xd8] sm:$0xff] %v1232_v20  ;;  %1328 = vst [vmem:[%s2228_s22 + $0x1d8] sm:$0xff] %v1264_v21 }
 0x199   : > { %1294 = vst [vmem:[%s2228_s22 + $0xc8] sm:$0xff] %v1230_v24  ;;  %1326 = vst [vmem:[%s2228_s22 + $0x1c8] sm:$0xff] %v1262_v25 }
 0x19b   : > { %v1609_v26 = vpop.f32.mrb[28].mxu0  ;;  %v1641_v27 = vpop.f32.mrb[28].mxu1 }
 0x19c   : > { %v1235_v28 = vadd.f32 %v1609_v26, %v2222_v40  ;;  %v1267_v29 = vadd.f32 %v1641_v27, %v2222_v40  ;;  %v860_v30 = vpop.f32.mrb[29].mxu0  ;;  %v988_v31 = vpop.f32.mrb[29].mxu1 }
 0x19d   : > { %v1233_v32 = vadd.f32 %v2222_v40, %v860_v30  ;;  %v1265_v33 = vadd.f32 %v2222_v40, %v988_v31  ;;  %v1610_v34 = vpop.f32.mrb[30].mxu0  ;;  %v1642_v35 = vpop.f32.mrb[30].mxu1 }
 0x19e   : > { %1299 = vst [vmem:[%s2228_s22 + $0xf0] sm:$0xff] %v1235_v28  ;;  %1331 = vst [vmem:[%s2228_s22 + $0x1f0] sm:$0xff] %v1267_v29  ;;  %v1236_v36 = vadd.f32 %v1610_v34, %v2222_v40  ;;  %v1268_v37 = vadd.f32 %v1642_v35, %v2222_v40  ;;  %v863_v38 = vpop.f32.mrb[31].mxu0  ;;  %v991_v39 = vpop.f32.mrb[31].mxu1 }
 0x19f   : > { %1297 = vst [vmem:[%s2228_s22 + $0xe0] sm:$0xff] %v1233_v32  ;;  %1329 = vst [vmem:[%s2228_s22 + $0x1e0] sm:$0xff] %v1265_v33  ;;  %v1234_v41 = vadd.f32 %v2222_v40, %v863_v38  ;;  %v1266_v42 = vadd.f32 %v2222_v40, %v991_v39 }
 0x1a0   : > { %1300 = vst [vmem:[%s2228_s22 + $0xf8] sm:$0xff] %v1236_v36  ;;  %1332 = vst [vmem:[%s2228_s22 + $0x1f8] sm:$0xff] %v1268_v37 }
 0x1a1   : > { %1298 = vst [vmem:[%s2228_s22 + $0xe8] sm:$0xff] %v1234_v41  ;;  %1330 = vst [vmem:[%s2228_s22 + $0x1e8] sm:$0xff] %v1266_v42 }
 0x1a2   : > { %1885 = shalt.err (!%p1882_p5)
}
 0x1a3   : > { %s1886_s30 = scalar_lea.hbm %s2351_s26, 8192  ;;  %s1890_s7 = scalar_lea.hbm %s2412_s3, 65536 }
 0x1a4   : > { %p1887_p9 = scmp.ne.s32.totalorder %s2351_s26, %s1886_s30  ;;  %p1891_p3 = scmp.lt.u32.totalorder %s2351_s26, %s2412_s3 }
 0x1a5   : > { %p1892_p7 = scmp.lt.u32.totalorder %s1890_s7, %s1886_s30  ;;  %p1894_p2 = scmp.lt.u32.totalorder %s1886_s30, %s2351_s26 }
 0x1a6   : > { %p1888_p12 = pnand %p1887_p9, %p2117_p11 }
 0x1a7   : > { %p1893_p10 = por %p1892_p7, %p1891_p3 }
 0x1a8   : > { %p1889_p1 = pneg %p1888_p12 }
 0x1a9   : > { %p1895_p4 = por %p1894_p2, %p1893_p10 }
 0x1ab   : > { %p1896_p6 = pnand %p1895_p4, %p1889_p1 }
 0x1ad   : > { %1899 = shalt.err (!%p1896_p6)
}
 0x1ae   : > { %s1966_s22 = smov 128   ;;  %s1967_s24 = smov 8  }
 0x1af   : > { %1669 = dma.vmem_to_hbm [thread:$0]  (%p2117_p11), %s2353_s11, 8192, %s2351_s26, %s1334_s9, %s1966_s22, %s1966_s22, %s1967_s24  }
 0x1b0 PF: > { %p1691_p8 = scmp.ge.s32.totalorder %s1958_s17, 2  ;;  %s1363_s15 = sand.u32 1, %s1938_s12  }
 0x1b1   : > { %p2429_p13 = scmp.ne.s32.totalorder %s2420_s23, 0  ;;  %s1364_s18 = scalar_lea.sflag [#allocation5], %s1363_s15 }
 0x1b3   : > { %p1683_p0 = pnand %p1691_p8, %p2429_p13 }
 0x1b5   : > { %1933 = dma.done.wait (!%p1683_p0), %s1364_s18, 8192  }
 0x1b6   : > { %1935 = vsyncadd (!%p1683_p0), %s1364_s18, 4294959104  ;;  %s20_s17 = sadd.s32 1, %s1958_s17   ;;  %s2430_s12 = smov %s1942_s13 }
 0x1b7   : > { %p17_p5 = scmp.ge.s32.totalorder %s20_s17, 10   ;;  %s2431_s13 = smov %s1946_s14 }
 0x1b8   : > { %s2432_s14 = smov %s2126_s6  ;;  %s2433_s15 = smov %s1954_s16 }
 0x1b9   : > { %s2434_s16 = smov %s2436_s25  ;;  %19 = sbr.rel (!%p17_p5) target bundleno = 7 (0x7), region = 95 }
 0x1c0   :  { %1369 = vsyncpa [#allocation4], 1 }
 0x1c1   :  { %1371 = vsyncpa [#allocation4 + $0x1], 1 }
 0x1c2   :  { %1372 = vsyncpa [#allocation7], 1 }
 0x1c3   :  { %1373 = vsyncpa [#allocation5], 1 }
 0x1c4   :  { %1375 = vsyncpa [#allocation5 + $0x1], 1 }

</bundles_post_ra>
